<compile_context>
chip_gen: v6e
topology: v6e:2x2x1
jax: 0.10.0
libtpu: 0.0.40
codegen_flags: <defaults>
</compile_context>

<pallas_src>
import jax
import jax.numpy as jnp
from jax.experimental import pallas as pl
from jax.experimental.pallas import tpu as pltpu


COMPUTE_DTYPE = jnp.float32   # jnp.bfloat16 on v6e/v7x halves DMA/VMEM; epilogue stays f32
_BN_EPS = 1e-5                # PyTorch BatchNorm2d default

# Tap order t = (dy+1)*3 + (dx+1); matches the folded-weight column layout.
_TAPS = tuple((dy, dx) for dy in (-1, 0, 1) for dx in (-1, 0, 1))


def _fold_bn(w_oihw, gamma, beta, mean, var, eps=_BN_EPS):
    """Fold eval-mode BatchNorm2d into a bias-free 3x3 conv.

    Returns (w_col, b): w_col is (Cout, 9*Cin) with column index t*Cin + cin
    (t = (ky*3 + kx)), matching the in-kernel patch row packing; b is (Cout, 1).
    """
    s = gamma / jnp.sqrt(var + eps)                      # (Cout,)
    w = w_oihw * s[:, None, None, None]                  # scale per out-channel
    b = beta - mean * s                                  # (Cout,)
    c_out, c_in = w.shape[0], w.shape[1]
    # (Cout, Cin, 3, 3) -> (Cout, 3, 3, Cin) -> (Cout, 9*Cin)
    w_col = jnp.transpose(w, (0, 2, 3, 1)).reshape(c_out, 9 * c_in)
    return w_col.astype(jnp.float32), b.reshape(c_out, 1).astype(jnp.float32)


@jax.jit
def residual_conv_block(x_nchw, w1, bn1, w2, bn2, prelu_alpha):
    """Fused Pallas forward of _ResidualConvBlock (eval-mode BatchNorm)."""
    N, C, H, W = x_nchw.shape
    HW = H * W
    cd = COMPUTE_DTYPE

    # Fold BN into the convs; weights already in the im2col (Cout, 9Cin) layout.
    w1c, b1c = _fold_bn(w1, *bn1)
    w2c, b2c = _fold_bn(w2, *bn2)
    # nn.PReLU() default is one shared slope; broadcast to (C, 1) so a
    # per-channel PReLU also works.
    alpha = jnp.broadcast_to(
        jnp.asarray(prelu_alpha, jnp.float32).reshape(-1), (C,)).reshape(C, 1)

    # Channel-major, lane-dense input: NCHW -> (N, C, H*W) is a free reshape.
    x_cm = x_nchw.reshape(N, C, HW).astype(cd)

    # Per-tap 0/1 validity masks realizing the zero 'same' padding (the roll
    # wrap-around always lands in a masked position).  Shape (9, H*W).
    hh = jnp.arange(HW, dtype=jnp.int32) // W
    ww = jnp.arange(HW, dtype=jnp.int32) % W
    masks = jnp.stack([
        ((hh + dy >= 0) & (hh + dy < H) & (ww + dx >= 0) & (ww + dx < W))
        for dy, dx in _TAPS
    ]).astype(cd)                                                   # (9, HW)

    def kernel(x_ref, m_ref, w1_ref, b1_ref, w2_ref, b2_ref, a_ref, o_ref,
               patches_ref):
        xin = x_ref[0]                                   # (C, HW), compute dtype
        m_all = m_ref[...]                               # (9, HW)

        def im2col(slab):
            # Pack all 9 taps into K rows: patches[t*C:(t+1)*C, :] = shifted slab.
            # Shift = lane rotation (XLU); border zeroing via the 0/1 mask.
            for t, (dy, dx) in enumerate(_TAPS):
                off = dy * W + dx
                if off == 0:
                    patches_ref[t * C:(t + 1) * C, :] = slab
                else:
                    shifted = pltpu.roll(slab, shift=(-off) % HW, axis=1)
                    patches_ref[t * C:(t + 1) * C, :] = shifted * m_all[t:t + 1, :]

        # ---- conv1 (+BN1 folded) as one MXU matmul (K = 9*C), PReLU in f32 ----
        im2col(xin)
        y = jnp.dot(w1_ref[...], patches_ref[...],
                    preferred_element_type=jnp.float32) + b1_ref[...]
        y = jnp.where(y >= 0.0, y, a_ref[...] * y)       # PReLU, f32

        # ---- conv2 (+BN2 folded) + residual add; intermediate never leaves VMEM
        im2col(y.astype(patches_ref.dtype))
        z = jnp.dot(w2_ref[...], patches_ref[...],
                    preferred_element_type=jnp.float32) + b2_ref[...]
        z = z + xin.astype(jnp.float32)                  # residual identity

        o_ref[0] = z.astype(o_ref.dtype)                 # lane-dense (C, HW) store

    # VMEM budget: double-buffered I/O blocks + constants + patch scratch.
    itemsize = jnp.dtype(cd).itemsize
    blk_in = C * HW * itemsize
    blk_out = C * HW * 4
    const_bytes = 9 * HW * itemsize + 2 * (C * 9 * C) * itemsize + 3 * C * 4
    scratch_bytes = 9 * C * HW * itemsize
    est = 2 * (blk_in + blk_out) + 2 * const_bytes + scratch_bytes
    vmem_limit = int(min(max(4 * est + (1 << 20), 16 << 20), 32 << 20))

    flops = 2 * (2 * N * HW * 9 * C * C)                 # two 3x3 convs
    bytes_accessed = int(N * C * HW * (itemsize + 4)
                         + 2 * C * 9 * C * itemsize + 9 * HW * itemsize)

    out_cm = pl.pallas_call(
        kernel,
        out_shape=jax.ShapeDtypeStruct((N, C, HW), jnp.float32),
        grid=(N,),
        in_specs=[
            pl.BlockSpec((1, C, HW), lambda n: (n, 0, 0)),   # x (channel-major)
            pl.BlockSpec((9, HW), lambda n: (0, 0)),         # tap masks
            pl.BlockSpec((C, 9 * C), lambda n: (0, 0)),      # w1 (folded)
            pl.BlockSpec((C, 1), lambda n: (0, 0)),          # b1
            pl.BlockSpec((C, 9 * C), lambda n: (0, 0)),      # w2 (folded)
            pl.BlockSpec((C, 1), lambda n: (0, 0)),          # b2
            pl.BlockSpec((C, 1), lambda n: (0, 0)),          # PReLU alpha
        ],
        out_specs=pl.BlockSpec((1, C, HW), lambda n: (n, 0, 0)),
        scratch_shapes=[
            pltpu.VMEM((9 * C, HW), cd),                     # im2col patches (reused)
        ],
        compiler_params=pltpu.CompilerParams(
            dimension_semantics=("parallel",),
            vmem_limit_bytes=vmem_limit),
        cost_estimate=pl.CostEstimate(flops=flops, transcendentals=0,
                                      bytes_accessed=bytes_accessed),
    )(x_cm, masks, w1c.astype(cd), b1c, w2c.astype(cd), b2c, alpha)

    # (N, C, H*W) -> NCHW is a free reshape (no transpose pass).
    return out_cm.reshape(N, C, H, W)


# ---------------------------------------------------------------------------
# Pure-JAX (XLA) reference for correctness checking.
# ---------------------------------------------------------------------------
def ref_residual_conv_block(x, w1, bn1, w2, bn2, alpha, eps=_BN_EPS):
    def conv(v, w):
        return jax.lax.conv_general_dilated(
            v, w, window_strides=(1, 1), padding=((1, 1), (1, 1)),
            dimension_numbers=("NCHW", "OIHW", "NCHW"))

    def bn(v, p):
        g, b, m, var = p
        s = g / jnp.sqrt(var + eps)
        return v * s[None, :, None, None] + (b - m * s)[None, :, None, None]

    y = bn(conv(x, w1), bn1)
    y = jnp.where(y >= 0, y, alpha * y)          # PReLU
    z = bn(conv(y, w2), bn2)
    return z + x


if __name__ == "__main__":
    key = jax.random.PRNGKey(0)
    N, C, H, W = 2, 4, 16, 16                    # _ResidualConvBlock(channels=4)
    ks = jax.random.split(key, 10)

    x = jax.random.uniform(ks[0], (N, C, H, W), jnp.float32)

    # Conv weights (bias=False), kaiming-normal style init.
    std = (2.0 / (C * 9)) ** 0.5
    w1 = std * jax.random.normal(ks[1], (C, C, 3, 3), jnp.float32)
    w2 = std * jax.random.normal(ks[2], (C, C, 3, 3), jnp.float32)

    # BatchNorm2d parameters (gamma, beta, running_mean, running_var).
    bn1 = (1.0 + 0.1 * jax.random.normal(ks[3], (C,), jnp.float32),
           0.1 * jax.random.normal(ks[4], (C,), jnp.float32),
           0.1 * jax.random.normal(ks[5], (C,), jnp.float32),
           1.0 + 0.1 * jax.random.uniform(ks[6], (C,), jnp.float32))
    bn2 = (1.0 + 0.1 * jax.random.normal(ks[7], (C,), jnp.float32),
           0.1 * jax.random.normal(ks[8], (C,), jnp.float32),
           0.1 * jax.random.normal(ks[9], (C,), jnp.float32),
           jnp.ones((C,), jnp.float32))
    alpha = jnp.float32(0.25)                    # nn.PReLU() default init

    out = residual_conv_block(x, w1, bn1, w2, bn2, alpha)
    out = jax.block_until_ready(out)

    ref = jax.block_until_ready(ref_residual_conv_block(x, w1, bn1, w2, bn2, alpha))

    assert out.shape == (N, C, H, W)
    assert out.dtype == jnp.float32
    assert bool(jnp.all(jnp.isfinite(out)))
    tol = 1e-3 if COMPUTE_DTYPE == jnp.float32 else 5e-2
    max_err = float(jnp.max(jnp.abs(out - ref)))
    assert max_err < tol, f"mismatch vs XLA reference: max abs err = {max_err}"
    print("KERNEL_OK")
</pallas_src>

<mosaic_0001>
module attributes {stable_mosaic.version = 11 : i64} {
  func.func @kernel(%arg0: i32, %arg1: memref<1x4x256xf32, #tpu.memory_space<vmem>>, %arg2: memref<9x256xf32, #tpu.memory_space<vmem>>, %arg3: memref<4x36xf32, #tpu.memory_space<vmem>>, %arg4: memref<4x1xf32, #tpu.memory_space<vmem>>, %arg5: memref<4x36xf32, #tpu.memory_space<vmem>>, %arg6: memref<4x1xf32, #tpu.memory_space<vmem>>, %arg7: memref<4x1xf32, #tpu.memory_space<vmem>>, %arg8: memref<1x4x256xf32, #tpu.memory_space<vmem>>, %arg9: memref<36x256xf32, #tpu.memory_space<vmem>>) attributes {dimension_semantics = [#tpu.dimension_semantics<parallel>], iteration_bounds = array<i64: 2>, scalar_prefetch = 0 : i64, scratch_operands = 1 : i64, tpu.core_type = #tpu.core_type<tc>, window_params = [{transform_indices = @transform_0, window_bounds = array<i64: 1, 4, 256>}, {pipeline_mode = #tpu.pipeline_mode<synchronous>, transform_indices = @transform_1, window_bounds = array<i64: 9, 256>}, {pipeline_mode = #tpu.pipeline_mode<synchronous>, transform_indices = @transform_2, window_bounds = array<i64: 4, 36>}, {pipeline_mode = #tpu.pipeline_mode<synchronous>, transform_indices = @transform_3, window_bounds = array<i64: 4, 1>}, {pipeline_mode = #tpu.pipeline_mode<synchronous>, transform_indices = @transform_4, window_bounds = array<i64: 4, 36>}, {pipeline_mode = #tpu.pipeline_mode<synchronous>, transform_indices = @transform_5, window_bounds = array<i64: 4, 1>}, {pipeline_mode = #tpu.pipeline_mode<synchronous>, transform_indices = @transform_6, window_bounds = array<i64: 4, 1>}, {transform_indices = @transform_7, window_bounds = array<i64: 1, 4, 256>}]} {
    %c0 = arith.constant 0 : index
    %c0_0 = arith.constant 0 : index
    %c0_1 = arith.constant 0 : index
    %0 = vector.load %arg1[%c0, %c0_0, %c0_1] : memref<1x4x256xf32, #tpu.memory_space<vmem>>, vector<1x4x256xf32>
    %1 = vector.shape_cast %0 : vector<1x4x256xf32> to vector<4x256xf32>
    %c0_2 = arith.constant 0 : index
    %c0_3 = arith.constant 0 : index
    %2 = vector.load %arg2[%c0_2, %c0_3] : memref<9x256xf32, #tpu.memory_space<vmem>>, vector<9x256xf32>
    %c17_i32 = arith.constant 17 : i32
    %3 = tpu.dynamic_rotate %1 by %c17_i32 dim 1 : vector<4x256xf32>, i32 -> vector<4x256xf32>
    %4 = vector.extract_strided_slice %2 {offsets = [0, 0], sizes = [1, 256], strides = [1, 1]} : vector<9x256xf32> to vector<1x256xf32>
    %5 = vector.broadcast %4 : vector<1x256xf32> to vector<4x256xf32>
    %6 = arith.mulf %3, %5 : vector<4x256xf32>
    %c0_4 = arith.constant 0 : index
    %c0_5 = arith.constant 0 : index
    %7 = vector.load %arg9[%c0_4, %c0_5] : memref<36x256xf32, #tpu.memory_space<vmem>>, vector<4x256xf32>
    tpu.vector_store %arg9[%c0_4, %c0_5], %6 {strides = array<i32>} : memref<36x256xf32, #tpu.memory_space<vmem>>, vector<4x256xf32>,
    %c16_i32 = arith.constant 16 : i32
    %8 = tpu.dynamic_rotate %1 by %c16_i32 dim 1 : vector<4x256xf32>, i32 -> vector<4x256xf32>
    %9 = vector.extract_strided_slice %2 {offsets = [1, 0], sizes = [1, 256], strides = [1, 1]} : vector<9x256xf32> to vector<1x256xf32>
    %10 = vector.broadcast %9 : vector<1x256xf32> to vector<4x256xf32>
    %11 = arith.mulf %8, %10 : vector<4x256xf32>
    %c4 = arith.constant 4 : index
    %c0_6 = arith.constant 0 : index
    %12 = vector.load %arg9[%c4, %c0_6] : memref<36x256xf32, #tpu.memory_space<vmem>>, vector<4x256xf32>
    tpu.vector_store %arg9[%c4, %c0_6], %11 {strides = array<i32>} : memref<36x256xf32, #tpu.memory_space<vmem>>, vector<4x256xf32>,
    %c15_i32 = arith.constant 15 : i32
    %13 = tpu.dynamic_rotate %1 by %c15_i32 dim 1 : vector<4x256xf32>, i32 -> vector<4x256xf32>
    %14 = vector.extract_strided_slice %2 {offsets = [2, 0], sizes = [1, 256], strides = [1, 1]} : vector<9x256xf32> to vector<1x256xf32>
    %15 = vector.broadcast %14 : vector<1x256xf32> to vector<4x256xf32>
    %16 = arith.mulf %13, %15 : vector<4x256xf32>
    %c8 = arith.constant 8 : index
    %c0_7 = arith.constant 0 : index
    %17 = vector.load %arg9[%c8, %c0_7] : memref<36x256xf32, #tpu.memory_space<vmem>>, vector<4x256xf32>
    tpu.vector_store %arg9[%c8, %c0_7], %16 {strides = array<i32>} : memref<36x256xf32, #tpu.memory_space<vmem>>, vector<4x256xf32>,
    %c1_i32 = arith.constant 1 : i32
    %18 = tpu.dynamic_rotate %1 by %c1_i32 dim 1 : vector<4x256xf32>, i32 -> vector<4x256xf32>
    %19 = vector.extract_strided_slice %2 {offsets = [3, 0], sizes = [1, 256], strides = [1, 1]} : vector<9x256xf32> to vector<1x256xf32>
    %20 = vector.broadcast %19 : vector<1x256xf32> to vector<4x256xf32>
    %21 = arith.mulf %18, %20 : vector<4x256xf32>
    %c12 = arith.constant 12 : index
    %c0_8 = arith.constant 0 : index
    %22 = vector.load %arg9[%c12, %c0_8] : memref<36x256xf32, #tpu.memory_space<vmem>>, vector<4x256xf32>
    tpu.vector_store %arg9[%c12, %c0_8], %21 {strides = array<i32>} : memref<36x256xf32, #tpu.memory_space<vmem>>, vector<4x256xf32>,
    %c16 = arith.constant 16 : index
    %c0_9 = arith.constant 0 : index
    %23 = vector.load %arg9[%c16, %c0_9] : memref<36x256xf32, #tpu.memory_space<vmem>>, vector<4x256xf32>
    tpu.vector_store %arg9[%c16, %c0_9], %1 {strides = array<i32>} : memref<36x256xf32, #tpu.memory_space<vmem>>, vector<4x256xf32>,
    %c255_i32 = arith.constant 255 : i32
    %24 = tpu.dynamic_rotate %1 by %c255_i32 dim 1 : vector<4x256xf32>, i32 -> vector<4x256xf32>
    %25 = vector.extract_strided_slice %2 {offsets = [5, 0], sizes = [1, 256], strides = [1, 1]} : vector<9x256xf32> to vector<1x256xf32>
    %26 = vector.broadcast %25 : vector<1x256xf32> to vector<4x256xf32>
    %27 = arith.mulf %24, %26 : vector<4x256xf32>
    %c20 = arith.constant 20 : index
    %c0_10 = arith.constant 0 : index
    %28 = vector.load %arg9[%c20, %c0_10] : memref<36x256xf32, #tpu.memory_space<vmem>>, vector<4x256xf32>
    tpu.vector_store %arg9[%c20, %c0_10], %27 {strides = array<i32>} : memref<36x256xf32, #tpu.memory_space<vmem>>, vector<4x256xf32>,
    %c241_i32 = arith.constant 241 : i32
    %29 = tpu.dynamic_rotate %1 by %c241_i32 dim 1 : vector<4x256xf32>, i32 -> vector<4x256xf32>
    %30 = vector.extract_strided_slice %2 {offsets = [6, 0], sizes = [1, 256], strides = [1, 1]} : vector<9x256xf32> to vector<1x256xf32>
    %31 = vector.broadcast %30 : vector<1x256xf32> to vector<4x256xf32>
    %32 = arith.mulf %29, %31 : vector<4x256xf32>
    %c24 = arith.constant 24 : index
    %c0_11 = arith.constant 0 : index
    %33 = vector.load %arg9[%c24, %c0_11] : memref<36x256xf32, #tpu.memory_space<vmem>>, vector<4x256xf32>
    tpu.vector_store %arg9[%c24, %c0_11], %32 {strides = array<i32>} : memref<36x256xf32, #tpu.memory_space<vmem>>, vector<4x256xf32>,
    %c240_i32 = arith.constant 240 : i32
    %34 = tpu.dynamic_rotate %1 by %c240_i32 dim 1 : vector<4x256xf32>, i32 -> vector<4x256xf32>
    %35 = vector.extract_strided_slice %2 {offsets = [7, 0], sizes = [1, 256], strides = [1, 1]} : vector<9x256xf32> to vector<1x256xf32>
    %36 = vector.broadcast %35 : vector<1x256xf32> to vector<4x256xf32>
    %37 = arith.mulf %34, %36 : vector<4x256xf32>
    %c28 = arith.constant 28 : index
    %c0_12 = arith.constant 0 : index
    %38 = vector.load %arg9[%c28, %c0_12] : memref<36x256xf32, #tpu.memory_space<vmem>>, vector<4x256xf32>
    tpu.vector_store %arg9[%c28, %c0_12], %37 {strides = array<i32>} : memref<36x256xf32, #tpu.memory_space<vmem>>, vector<4x256xf32>,
    %c239_i32 = arith.constant 239 : i32
    %39 = tpu.dynamic_rotate %1 by %c239_i32 dim 1 : vector<4x256xf32>, i32 -> vector<4x256xf32>
    %40 = vector.extract_strided_slice %2 {offsets = [8, 0], sizes = [1, 256], strides = [1, 1]} : vector<9x256xf32> to vector<1x256xf32>
    %41 = vector.broadcast %40 : vector<1x256xf32> to vector<4x256xf32>
    %42 = arith.mulf %39, %41 : vector<4x256xf32>
    %c32 = arith.constant 32 : index
    %c0_13 = arith.constant 0 : index
    %43 = vector.load %arg9[%c32, %c0_13] : memref<36x256xf32, #tpu.memory_space<vmem>>, vector<4x256xf32>
    tpu.vector_store %arg9[%c32, %c0_13], %42 {strides = array<i32>} : memref<36x256xf32, #tpu.memory_space<vmem>>, vector<4x256xf32>,
    %c0_14 = arith.constant 0 : index
    %c0_15 = arith.constant 0 : index
    %44 = vector.load %arg3[%c0_14, %c0_15] : memref<4x36xf32, #tpu.memory_space<vmem>>, vector<4x36xf32>
    %c0_16 = arith.constant 0 : index
    %c0_17 = arith.constant 0 : index
    %45 = vector.load %arg9[%c0_16, %c0_17] : memref<36x256xf32, #tpu.memory_space<vmem>>, vector<36x256xf32>
    %cst = arith.constant dense<0.000000e+00> : vector<4x256xf32>
    %46 = tpu.matmul %44, %45, %cst {dimension_numbers = #tpu.dot_dimension_numbers<[1], [0], [0], [1], [0, 0, 1, 1], [], []>} : vector<4x36xf32>, vector<36x256xf32>, vector<4x256xf32> -> vector<4x256xf32>
    %c0_18 = arith.constant 0 : index
    %c0_19 = arith.constant 0 : index
    %47 = vector.load %arg4[%c0_18, %c0_19] : memref<4x1xf32, #tpu.memory_space<vmem>>, vector<4x1xf32>
    %48 = vector.broadcast %47 : vector<4x1xf32> to vector<4x256xf32>
    %49 = arith.addf %46, %48 : vector<4x256xf32>
    %cst_20 = arith.constant 0.000000e+00 : f32
    %50 = vector.broadcast %cst_20 : f32 to vector<4x256xf32>
    %51 = arith.cmpf oge, %49, %50 : vector<4x256xf32>
    %c0_21 = arith.constant 0 : index
    %c0_22 = arith.constant 0 : index
    %52 = vector.load %arg7[%c0_21, %c0_22] : memref<4x1xf32, #tpu.memory_space<vmem>>, vector<4x1xf32>
    %53 = vector.broadcast %52 : vector<4x1xf32> to vector<4x256xf32>
    %54 = arith.mulf %53, %49 : vector<4x256xf32>
    %55 = arith.select %51, %49, %54 : vector<4x256xi1>, vector<4x256xf32>
    %c17_i32_23 = arith.constant 17 : i32
    %56 = tpu.dynamic_rotate %55 by %c17_i32_23 dim 1 : vector<4x256xf32>, i32 -> vector<4x256xf32>
    %57 = vector.extract_strided_slice %2 {offsets = [0, 0], sizes = [1, 256], strides = [1, 1]} : vector<9x256xf32> to vector<1x256xf32>
    %58 = vector.broadcast %57 : vector<1x256xf32> to vector<4x256xf32>
    %59 = arith.mulf %56, %58 : vector<4x256xf32>
    %c0_24 = arith.constant 0 : index
    %c0_25 = arith.constant 0 : index
    %60 = vector.load %arg9[%c0_24, %c0_25] : memref<36x256xf32, #tpu.memory_space<vmem>>, vector<4x256xf32>
    tpu.vector_store %arg9[%c0_24, %c0_25], %59 {strides = array<i32>} : memref<36x256xf32, #tpu.memory_space<vmem>>, vector<4x256xf32>,
    %c16_i32_26 = arith.constant 16 : i32
    %61 = tpu.dynamic_rotate %55 by %c16_i32_26 dim 1 : vector<4x256xf32>, i32 -> vector<4x256xf32>
    %62 = vector.extract_strided_slice %2 {offsets = [1, 0], sizes = [1, 256], strides = [1, 1]} : vector<9x256xf32> to vector<1x256xf32>
    %63 = vector.broadcast %62 : vector<1x256xf32> to vector<4x256xf32>
    %64 = arith.mulf %61, %63 : vector<4x256xf32>
    %c4_27 = arith.constant 4 : index
    %c0_28 = arith.constant 0 : index
    %65 = vector.load %arg9[%c4_27, %c0_28] : memref<36x256xf32, #tpu.memory_space<vmem>>, vector<4x256xf32>
    tpu.vector_store %arg9[%c4_27, %c0_28], %64 {strides = array<i32>} : memref<36x256xf32, #tpu.memory_space<vmem>>, vector<4x256xf32>,
    %c15_i32_29 = arith.constant 15 : i32
    %66 = tpu.dynamic_rotate %55 by %c15_i32_29 dim 1 : vector<4x256xf32>, i32 -> vector<4x256xf32>
    %67 = vector.extract_strided_slice %2 {offsets = [2, 0], sizes = [1, 256], strides = [1, 1]} : vector<9x256xf32> to vector<1x256xf32>
    %68 = vector.broadcast %67 : vector<1x256xf32> to vector<4x256xf32>
    %69 = arith.mulf %66, %68 : vector<4x256xf32>
    %c8_30 = arith.constant 8 : index
    %c0_31 = arith.constant 0 : index
    %70 = vector.load %arg9[%c8_30, %c0_31] : memref<36x256xf32, #tpu.memory_space<vmem>>, vector<4x256xf32>
    tpu.vector_store %arg9[%c8_30, %c0_31], %69 {strides = array<i32>} : memref<36x256xf32, #tpu.memory_space<vmem>>, vector<4x256xf32>,
    %c1_i32_32 = arith.constant 1 : i32
    %71 = tpu.dynamic_rotate %55 by %c1_i32_32 dim 1 : vector<4x256xf32>, i32 -> vector<4x256xf32>
    %72 = vector.extract_strided_slice %2 {offsets = [3, 0], sizes = [1, 256], strides = [1, 1]} : vector<9x256xf32> to vector<1x256xf32>
    %73 = vector.broadcast %72 : vector<1x256xf32> to vector<4x256xf32>
    %74 = arith.mulf %71, %73 : vector<4x256xf32>
    %c12_33 = arith.constant 12 : index
    %c0_34 = arith.constant 0 : index
    %75 = vector.load %arg9[%c12_33, %c0_34] : memref<36x256xf32, #tpu.memory_space<vmem>>, vector<4x256xf32>
    tpu.vector_store %arg9[%c12_33, %c0_34], %74 {strides = array<i32>} : memref<36x256xf32, #tpu.memory_space<vmem>>, vector<4x256xf32>,
    %c16_35 = arith.constant 16 : index
    %c0_36 = arith.constant 0 : index
    %76 = vector.load %arg9[%c16_35, %c0_36] : memref<36x256xf32, #tpu.memory_space<vmem>>, vector<4x256xf32>
    tpu.vector_store %arg9[%c16_35, %c0_36], %55 {strides = array<i32>} : memref<36x256xf32, #tpu.memory_space<vmem>>, vector<4x256xf32>,
    %c255_i32_37 = arith.constant 255 : i32
    %77 = tpu.dynamic_rotate %55 by %c255_i32_37 dim 1 : vector<4x256xf32>, i32 -> vector<4x256xf32>
    %78 = vector.extract_strided_slice %2 {offsets = [5, 0], sizes = [1, 256], strides = [1, 1]} : vector<9x256xf32> to vector<1x256xf32>
    %79 = vector.broadcast %78 : vector<1x256xf32> to vector<4x256xf32>
    %80 = arith.mulf %77, %79 : vector<4x256xf32>
    %c20_38 = arith.constant 20 : index
    %c0_39 = arith.constant 0 : index
    %81 = vector.load %arg9[%c20_38, %c0_39] : memref<36x256xf32, #tpu.memory_space<vmem>>, vector<4x256xf32>
    tpu.vector_store %arg9[%c20_38, %c0_39], %80 {strides = array<i32>} : memref<36x256xf32, #tpu.memory_space<vmem>>, vector<4x256xf32>,
    %c241_i32_40 = arith.constant 241 : i32
    %82 = tpu.dynamic_rotate %55 by %c241_i32_40 dim 1 : vector<4x256xf32>, i32 -> vector<4x256xf32>
    %83 = vector.extract_strided_slice %2 {offsets = [6, 0], sizes = [1, 256], strides = [1, 1]} : vector<9x256xf32> to vector<1x256xf32>
    %84 = vector.broadcast %83 : vector<1x256xf32> to vector<4x256xf32>
    %85 = arith.mulf %82, %84 : vector<4x256xf32>
    %c24_41 = arith.constant 24 : index
    %c0_42 = arith.constant 0 : index
    %86 = vector.load %arg9[%c24_41, %c0_42] : memref<36x256xf32, #tpu.memory_space<vmem>>, vector<4x256xf32>
    tpu.vector_store %arg9[%c24_41, %c0_42], %85 {strides = array<i32>} : memref<36x256xf32, #tpu.memory_space<vmem>>, vector<4x256xf32>,
    %c240_i32_43 = arith.constant 240 : i32
    %87 = tpu.dynamic_rotate %55 by %c240_i32_43 dim 1 : vector<4x256xf32>, i32 -> vector<4x256xf32>
    %88 = vector.extract_strided_slice %2 {offsets = [7, 0], sizes = [1, 256], strides = [1, 1]} : vector<9x256xf32> to vector<1x256xf32>
    %89 = vector.broadcast %88 : vector<1x256xf32> to vector<4x256xf32>
    %90 = arith.mulf %87, %89 : vector<4x256xf32>
    %c28_44 = arith.constant 28 : index
    %c0_45 = arith.constant 0 : index
    %91 = vector.load %arg9[%c28_44, %c0_45] : memref<36x256xf32, #tpu.memory_space<vmem>>, vector<4x256xf32>
    tpu.vector_store %arg9[%c28_44, %c0_45], %90 {strides = array<i32>} : memref<36x256xf32, #tpu.memory_space<vmem>>, vector<4x256xf32>,
    %c239_i32_46 = arith.constant 239 : i32
    %92 = tpu.dynamic_rotate %55 by %c239_i32_46 dim 1 : vector<4x256xf32>, i32 -> vector<4x256xf32>
    %93 = vector.extract_strided_slice %2 {offsets = [8, 0], sizes = [1, 256], strides = [1, 1]} : vector<9x256xf32> to vector<1x256xf32>
    %94 = vector.broadcast %93 : vector<1x256xf32> to vector<4x256xf32>
    %95 = arith.mulf %92, %94 : vector<4x256xf32>
    %c32_47 = arith.constant 32 : index
    %c0_48 = arith.constant 0 : index
    %96 = vector.load %arg9[%c32_47, %c0_48] : memref<36x256xf32, #tpu.memory_space<vmem>>, vector<4x256xf32>
    tpu.vector_store %arg9[%c32_47, %c0_48], %95 {strides = array<i32>} : memref<36x256xf32, #tpu.memory_space<vmem>>, vector<4x256xf32>,
    %c0_49 = arith.constant 0 : index
    %c0_50 = arith.constant 0 : index
    %97 = vector.load %arg5[%c0_49, %c0_50] : memref<4x36xf32, #tpu.memory_space<vmem>>, vector<4x36xf32>
    %c0_51 = arith.constant 0 : index
    %c0_52 = arith.constant 0 : index
    %98 = vector.load %arg9[%c0_51, %c0_52] : memref<36x256xf32, #tpu.memory_space<vmem>>, vector<36x256xf32>
    %cst_53 = arith.constant dense<0.000000e+00> : vector<4x256xf32>
    %99 = tpu.matmul %97, %98, %cst_53 {dimension_numbers = #tpu.dot_dimension_numbers<[1], [0], [0], [1], [0, 0, 1, 1], [], []>} : vector<4x36xf32>, vector<36x256xf32>, vector<4x256xf32> -> vector<4x256xf32>
    %c0_54 = arith.constant 0 : index
    %c0_55 = arith.constant 0 : index
    %100 = vector.load %arg6[%c0_54, %c0_55] : memref<4x1xf32, #tpu.memory_space<vmem>>, vector<4x1xf32>
    %101 = vector.broadcast %100 : vector<4x1xf32> to vector<4x256xf32>
    %102 = arith.addf %99, %101 : vector<4x256xf32>
    %103 = arith.addf %102, %1 : vector<4x256xf32>
    %c0_56 = arith.constant 0 : index
    %c0_57 = arith.constant 0 : index
    %c0_58 = arith.constant 0 : index
    %104 = vector.load %arg8[%c0_56, %c0_57, %c0_58] : memref<1x4x256xf32, #tpu.memory_space<vmem>>, vector<1x4x256xf32>
    %105 = vector.shape_cast %104 : vector<1x4x256xf32> to vector<4x256xf32>
    %106 = vector.shape_cast %103 : vector<4x256xf32> to vector<1x4x256xf32>
    tpu.vector_store %arg8[%c0_56, %c0_57, %c0_58], %106 {strides = array<i32>} : memref<1x4x256xf32, #tpu.memory_space<vmem>>, vector<1x4x256xf32>,
    return
  }
  func.func @transform_0(%arg0: i32) -> (i32, i32, i32) {
    %c0_i32 = arith.constant 0 : i32
    %c0_i32_0 = arith.constant 0 : i32
    %c0_i32_1 = arith.constant 0 : i32
    return %arg0, %c0_i32, %c0_i32_0 : i32, i32, i32
  }
  func.func @transform_1(%arg0: i32) -> (i32, i32) {
    %c0_i32 = arith.constant 0 : i32
    %c0_i32_0 = arith.constant 0 : i32
    %c0_i32_1 = arith.constant 0 : i32
    return %c0_i32, %c0_i32_0 : i32, i32
  }
  func.func @transform_2(%arg0: i32) -> (i32, i32) {
    %c0_i32 = arith.constant 0 : i32
    %c0_i32_0 = arith.constant 0 : i32
    %c0_i32_1 = arith.constant 0 : i32
    return %c0_i32, %c0_i32_0 : i32, i32
  }
  func.func @transform_3(%arg0: i32) -> (i32, i32) {
    %c0_i32 = arith.constant 0 : i32
    %c0_i32_0 = arith.constant 0 : i32
    %c0_i32_1 = arith.constant 0 : i32
    return %c0_i32, %c0_i32_0 : i32, i32
  }
  func.func @transform_4(%arg0: i32) -> (i32, i32) {
    %c0_i32 = arith.constant 0 : i32
    %c0_i32_0 = arith.constant 0 : i32
    %c0_i32_1 = arith.constant 0 : i32
    return %c0_i32, %c0_i32_0 : i32, i32
  }
  func.func @transform_5(%arg0: i32) -> (i32, i32) {
    %c0_i32 = arith.constant 0 : i32
    %c0_i32_0 = arith.constant 0 : i32
    %c0_i32_1 = arith.constant 0 : i32
    return %c0_i32, %c0_i32_0 : i32, i32
  }
  func.func @transform_6(%arg0: i32) -> (i32, i32) {
    %c0_i32 = arith.constant 0 : i32
    %c0_i32_0 = arith.constant 0 : i32
    %c0_i32_1 = arith.constant 0 : i32
    return %c0_i32, %c0_i32_0 : i32, i32
  }
  func.func @transform_7(%arg0: i32) -> (i32, i32, i32) {
    %c0_i32 = arith.constant 0 : i32
    %c0_i32_0 = arith.constant 0 : i32
    %c0_i32_1 = arith.constant 0 : i32
    return %arg0, %c0_i32, %c0_i32_0 : i32, i32, i32
  }
}

</mosaic_0001>

<bundles_post_ra>
// kernel: residual_conv_block.1
= control target key start
LH: loop header
LB: loop body
LE: loop exit
PB: predicated region body
PF: predicated region fallthrough
CT: control target
= control target key end

     0   :  { %s943_s24 = smov 0   ;;  %s1223_s0 = inlined_call_operand.vmem [shape: f32[2,4,256], index: 0, kind: input, shape index: {}]   ;;  %s1224_s1 = inlined_call_operand.vmem [shape: f32[9,256], index: 1, kind: input, shape index: {}]   ;;  %s1225_s2 = inlined_call_operand.vmem [shape: f32[4,36], index: 2, kind: input, shape index: {}]   ;;  %s1226_s3 = inlined_call_operand.vmem [shape: f32[4,1], index: 3, kind: input, shape index: {}]   ;;  %s1227_s4 = inlined_call_operand.vmem [shape: f32[4,36], index: 4, kind: input, shape index: {}]   ;;  %s1228_s5 = inlined_call_operand.vmem [shape: f32[4,1], index: 5, kind: input, shape index: {}]   ;;  %s1229_s6 = inlined_call_operand.vmem [shape: f32[4,1], index: 6, kind: input, shape index: {}]   ;;  %s1230_s7 = inlined_call_operand.vmem [shape: f32[2,4,256], index: 7, kind: output, shape index: {}]  }
   0x1 LB: > { %s843_s25 = sadd.s32 4294967295, %s891_s24   ;;  %p847_p0 = scmp.ge.s32.totalorder %s891_s24, 1  ;;  %s891_s24 = sphi %s943_s24, %s17_s24  }
   0x2   : > { %p237_p1 = scmp.lt.s32.totalorder %s891_s24, 3 }
   0x4   : > { %p238_p2 = pnand %p847_p0, %p237_p1 }
   0x5   : > { %p269_p3 = scmp.lt.s32.totalorder (!%p238_p2), %s843_s25, 1  ;;  %s893_s30 = smov (!%p238_p2), 111  }
   0x6   : > { %241 = sbr.rel (%p238_p2) target bundleno = 729 (0x2d9), region = 48  ;;  %s894_s8 = smov (!%p238_p2), 112  }
   0x7   : > { %s895_s9 = smov (!%p238_p2), 127   ;;  %s896_s10 = smov (!%p238_p2), 113  }
   0x8   : > { %s897_s11 = smov (!%p238_p2), 1   ;;  %s898_s12 = smov (!%p238_p2), 16  }
   0x9   : > { %s899_s13 = smov (!%p238_p2), 15   ;;  %s901_s14 = smov (!%p238_p2), 17  }
   0xb   : > { %s1232_s25 = smov (!%p269_p3, %s843_s25), 1  ;;  %v900_v2 = vmov 0.0   ;;  %v902_v3 = vmov 0   ;;  %v478_v4 = vld [vmem:[%s1226_s3] sm:$0xf]  ;;  %v291_v6 = vlaneseq  ;;  %v1019_v13 = vld [vmem:[%s1224_s1 + $0x8] sm:$0xff] }
   0xc   : > { %s862_s26 = sshll.u32 %s1232_s25, 3  ;;  %559 = vmatprep.mubr.f32.mxu0 %v900_v2  ;;  %774 = vmatprep.mubr.f32.mxu1 %v900_v2  ;;  %v568_v5 = vld [vmem:[%s1229_s6] sm:$0xf]  ;;  %v1025_v15 = vld [vmem:[%s1224_s1 + $0x10] ss:$0 sm:$0xff]  ;;  %vm488_vm4 = vcmask 1043456  }
   0xd   : > { %s273_s29 = scalar_lea.vmem %s1223_s0, %s862_s26  ;;  %882 = vset.pattern.permute.xlu0 %v902_v3  ;;  %883 = vset.pattern.permute.xlu1 %v902_v3  ;;  %v1005_v7 = vshrl.u32 %v291_v6, 7  ;;  %v1007_v8 = vand.u32 127, %v291_v6  ;;  %v1014_v12 = vld [vmem:[%s1224_s1] sm:$0xff]  ;;  %v1030_v16 = vld [vmem:[%s1224_s1 + $0x18] ss:$0 sm:$0xff]  ;;  %vm484_vm9 = vcmask 293888  }
   0xe   : > { %v959_v0 = vld [vmem:[%s273_s29] sm:$0xff] }
   0xf   : > { %448 = vrot.lane.b32.xlu1 %v959_v0, %s893_s30  ;;  %377 = vst [vmem:[#allocation2 + $0x48] sm:$0xf] %v959_v0  ;;  %423 = vrot.lane.b32.xlu0 %v959_v0, %s894_s8  ;;  %v968_v1 = vcombine.high %v959_v0, %v959_v0  ;;  %v388_v11 = vsub.s32 5, %v1005_v7  ;;  %vm452_vm0 = vcmp.lt.s32.totalorder %v1007_v8, 111  ;;  %v432_v14 = vsub.s32 7, %v1005_v7 }
  0x10   : > { %vm383_vm1 = vcmp.lt.s32.totalorder %v1007_v8, 127  ;;  %vm427_vm2 = vcmp.lt.s32.totalorder %v1007_v8, 112  ;;  %v413_v19 = vsub.s32 6, %v1005_v7  ;;  %vm408_vm3 = vcmp.lt.s32.totalorder %v1007_v8, 113 }
  0x11   : > { %378 = vst [vmem:[#allocation2 + $0x28] sm:$0xf] %v968_v1  ;;  %v1040_v22 = vrot.slane %v1014_v12, %v388_v11  ;;  %v1043_v23 = vrot.slane %v1019_v13, %v388_v11  ;;  %v1048_v26 = vrot.slane %v1014_v12, %v432_v14  ;;  %v1051_v27 = vrot.slane %v1019_v13, %v432_v14 }
  0x12   : > { %v1055_v30 = vrot.slane %v1014_v12, %v413_v19  ;;  %v1058_v31 = vrot.slane %v1019_v13, %v413_v19  ;;  %v361_v32 = vsub.s32 3, %v1005_v7  ;;  %vm356_vm5 = vcmp.lt.s32.totalorder %v1007_v8, 1 }
  0x13   : > { %379 = vrot.lane.b32.xlu0 %v959_v0, %s895_s9  ;;  %450 = vrot.lane.b32.xlu1 %v968_v1, %s893_s30  ;;  %v317_v53 = vsub.s32 1, %v1005_v7  ;;  %vm312_vm6 = vcmp.lt.s32.totalorder %v1007_v8, 16  ;;  %v342_v60 = vsub.s32 2, %v1005_v7  ;;  %vm337_vm7 = vcmp.lt.s32.totalorder %v1007_v8, 15 }
  0x14   : > { %v1079_v49 = vrot.slane %v1014_v12, %v361_v32  ;;  %v1084_v52 = vrot.slane %v1019_v13, %v361_v32  ;;  %v298_v19 = vsub.s32 0, %v1005_v7  ;;  %vm293_vm8 = vcmp.lt.s32.totalorder %v1007_v8, 17 }
  0x15   : > { %v1098_v63 = vrot.slane %v1014_v12, %v317_v53  ;;  %v1101_v2 = vrot.slane %v1019_v13, %v317_v53  ;;  %v1109_v11 = vrot.slane %v1014_v12, %v342_v60 }
  0x17   : > { %381 = vrot.lane.b32.xlu1 %v968_v1, %s895_s9  ;;  %425 = vrot.lane.b32.xlu0 %v968_v1, %s894_s8 }
  0x1b   : > { %406 = vrot.lane.b32.xlu1 %v968_v1, %s896_s10  ;;  %404 = vrot.lane.b32.xlu0 %v959_v0, %s896_s10 }
  0x1f   : > { %354 = vrot.lane.b32.xlu1 %v968_v1, %s897_s11  ;;  %352 = vrot.lane.b32.xlu0 %v959_v0, %s897_s11 }
  0x23   : > { %310 = vrot.lane.b32.xlu1 %v968_v1, %s898_s12  ;;  %308 = vrot.lane.b32.xlu0 %v959_v0, %s898_s12 }
  0x27   : > { %335 = vrot.lane.b32.xlu1 %v968_v1, %s899_s13  ;;  %333 = vrot.lane.b32.xlu0 %v959_v0, %s899_s13 }
  0x2b   : > { %289 = vrot.lane.b32.xlu1 %v968_v1, %s901_s14  ;;  %287 = vrot.lane.b32.xlu0 %v959_v0, %s901_s14 }
  0x2f   : > { %481 = vperm.xlu0 %882, %v478_v4   ;;  %571 = vperm.xlu1 %883, %v568_v5  }
  0x81   : > { %v449_v9 = vpop.permute.xlu1 %448  ;;  %v424_v10 = vpop.permute.xlu0 %423 }
  0x85   : > { %v380_v17 = vpop.permute.xlu0 %379  ;;  %v451_v18 = vpop.permute.xlu1 %450 }
  0x86   : > { %v453_v20 = vsel %vm452_vm0, %v449_v9, %v451_v18  ;;  %v454_v21 = vsel %vm452_vm0, %v451_v18, %v449_v9  ;;  %v1114_v18 = vrot.slane %v1019_v13, %v342_v60  ;;  %v695_v60 = vld [vmem:[%s1228_s5] sm:$0xf] }
  0x87   : > { %v463_v24 = vmul.f32 %v1025_v15, %v453_v20  ;;  %v464_v25 = vmul.f32 %v1030_v16, %v454_v21 }
  0x89   : > { %465 = vst [vmem:[#allocation2 + $0x40] sm:$0xf] %v463_v24  ;;  %466 = vst [vmem:[#allocation2 + $0x38] sm:$0xf] %v464_v25  ;;  %v382_v28 = vpop.permute.xlu1 %381  ;;  %v426_v29 = vpop.permute.xlu0 %425 }
  0x8a   : > { %v384_v33 = vsel %vm383_vm1, %v380_v17, %v382_v28  ;;  %v385_v34 = vsel %vm383_vm1, %v382_v28, %v380_v17  ;;  %v428_v35 = vsel %vm427_vm2, %v424_v10, %v426_v29  ;;  %v429_v36 = vsel %vm427_vm2, %v426_v29, %v424_v10 }
  0x8b   : > { %v394_v37 = vmul.f32 %v1040_v22, %v384_v33  ;;  %v395_v38 = vmul.f32 %v1043_v23, %v385_v34  ;;  %v438_v39 = vmul.f32 %v1048_v26, %v428_v35  ;;  %v439_v40 = vmul.f32 %v1051_v27, %v429_v36 }
  0x8d   : > { %v398_v41 = vrot.slane %v394_v37, 4  ;;  %v399_v42 = vrot.slane %v395_v38, 4  ;;  %v442_v43 = vrot.slane %v438_v39, 4  ;;  %v443_v44 = vrot.slane %v439_v40, 4  ;;  %v407_v45 = vpop.permute.xlu1 %406  ;;  %v405_v46 = vpop.permute.xlu0 %404 }
  0x8e   : > { %v409_v47 = vsel %vm408_vm3, %v405_v46, %v407_v45  ;;  %v410_v48 = vsel %vm408_vm3, %v407_v45, %v405_v46  ;;  %v1125_v37 = vrot.slane %v1014_v12, %v298_v19  ;;  %v1128_v38 = vrot.slane %v1019_v13, %v298_v19 }
  0x8f   : > { %402 = vst [vmem:[#allocation2 + $0x48] sm:$0xf0] %v398_v41  ;;  %403 = vst [vmem:[#allocation2 + $0x28] sm:$0xf0] %v399_v42  ;;  %v419_v50 = vmul.f32 %v1055_v30, %v409_v47  ;;  %v420_v51 = vmul.f32 %v1058_v31, %v410_v48  ;;  %v467_v47 = vld [vmem:[%s1225_s2] sm:$0xf] }
  0x90   : > { %446 = vst [vmem:[#allocation2 + $0x8] sm:$0xf0] %v442_v43  ;;  %447 = vst [vmem:[#allocation2 + $0x20] sm:$0xf0] %v443_v44  ;;  %v477_v54 = vld [vmem:[#allocation2 + $0x38] sm:$0xf] }
  0x91   : > { %v476_v55 = vld [vmem:[#allocation2 + $0x40] sm:$0xf]  ;;  %421 = vst [vmem:[#allocation2 + $0x8] sm:$0xf] %v419_v50  ;;  %422 = vst [vmem:[#allocation2 + $0x20] sm:$0xf] %v420_v51  ;;  %854 = vmatprep.subr.msk.mxu0 %vm488_vm4, %v477_v54  ;;  %v355_v56 = vpop.permute.xlu1 %354  ;;  %v353_v57 = vpop.permute.xlu0 %352 }
  0x92   : > { %v357_v58 = vsel %vm356_vm5, %v353_v57, %v355_v56  ;;  %v358_v59 = vsel %vm356_vm5, %v355_v56, %v353_v57  ;;  %855 = vmatpush1.msk.msra.mxu0 %vm488_vm4, %v476_v55 }
  0x93   : > { %v367_v61 = vmul.f32 %v1079_v49, %v358_v59  ;;  %v368_v62 = vmul.f32 %v1084_v52, %v357_v58 }
  0x95   : > { %v371_v3 = vrot.slane %v367_v61, 4  ;;  %v372_v4 = vrot.slane %v368_v62, 4  ;;  %v311_v5 = vpop.permute.xlu1 %310  ;;  %v309_v6 = vpop.permute.xlu0 %308 }
  0x96   : > { %v313_v9 = vsel %vm312_vm6, %v309_v6, %v311_v5  ;;  %v314_v10 = vsel %vm312_vm6, %v311_v5, %v309_v6  ;;  %v473_v34 = vld [vmem:[#allocation2 + $0x28] sm:$0xff] }
  0x97   : > { %375 = vst [vmem:[#allocation2 + $0x18] sm:$0xf0] %v371_v3  ;;  %376 = vst [vmem:[#allocation2 + $0x10] sm:$0xf0] %v372_v4  ;;  %v323_v14 = vmul.f32 %v1098_v63, %v314_v10  ;;  %v324_v17 = vmul.f32 %v1101_v2, %v313_v9  ;;  %v472_v36 = vld [vmem:[#allocation2 + $0x48] sm:$0xff] }
  0x98   : > { %v475_v20 = vld [vmem:[#allocation2 + $0x20] sm:$0xff]  ;;  %v474_v21 = vld [vmem:[#allocation2 + $0x8] sm:$0xff] }
  0x99   : > { %v327_v24 = vrot.slane %v323_v14, 4  ;;  %v328_v25 = vrot.slane %v324_v17, 4  ;;  %v336_v28 = vpop.permute.xlu1 %335  ;;  %519 = vmatprep.subr.mxu0 %v475_v20  ;;  %v334_v29 = vpop.permute.xlu0 %333 }
  0x9a   : > { %v338_v32 = vsel %vm337_vm7, %v334_v29, %v336_v28  ;;  %v339_v33 = vsel %vm337_vm7, %v336_v28, %v334_v29  ;;  %520 = vmatpush1.msra.mxu0 %v474_v21 }
  0x9b   : > { %331 = vst [vmem:[#allocation2 + $0x30] sm:$0xf0] %v327_v24  ;;  %332 = vst [vmem:[#allocation2] sm:$0xf0] %v328_v25  ;;  %v348_v7 = vmul.f32 %v1109_v11, %v339_v33  ;;  %v349_v35 = vmul.f32 %v1114_v18, %v338_v32  ;;  %521 = vmatprep.subr.mxu0 %v473_v34 }
  0x9c   : > { %522 = vmatpush1.msra.mxu0 %v472_v36 }
  0x9d   : > { %350 = vst [vmem:[#allocation2 + $0x18] sm:$0xf] %v348_v7  ;;  %351 = vst [vmem:[#allocation2 + $0x10] sm:$0xf] %v349_v35  ;;  %v290_v39 = vpop.permute.xlu1 %289  ;;  %v288_v40 = vpop.permute.xlu0 %287 }
  0x9e   : > { %v294_v41 = vsel %vm293_vm8, %v288_v40, %v290_v39  ;;  %v295_v42 = vsel %vm293_vm8, %v290_v39, %v288_v40 }
  0x9f   : > { %v304_v43 = vmul.f32 %v1125_v37, %v295_v42  ;;  %v305_v44 = vmul.f32 %v1128_v38, %v294_v41 }
  0xa1   : > { %306 = vst [vmem:[#allocation2 + $0x30] sm:$0xf] %v304_v43  ;;  %307 = vst [vmem:[#allocation2] sm:$0xf] %v305_v44 }
  0xa4   : > { %v471_v12 = vld [vmem:[#allocation2 + $0x10] sm:$0xff]  ;;  %v470_v13 = vld [vmem:[#allocation2 + $0x18] sm:$0xff] }
  0xa5   : > { %523 = vmatprep.subr.mxu0 %v471_v12 }
  0xa6   : > { %524 = vmatpush1.msra.mxu0 %v470_v13 }
  0xa8   : > { %v469_v45 = vld [vmem:[#allocation2] sm:$0xff]  ;;  %v468_v46 = vld [vmem:[#allocation2 + $0x30] sm:$0xff] }
  0xa9   : > { %525 = vmatprep.subr.mxu0 %v469_v45 }
  0xaa   : > { %526 = vmatpush1.msra.mxu0 %v468_v46  ;;  %v482_v48 = vpop.permute.xlu0 %481  ;;  %v572_v51 = vpop.permute.xlu1 %571 }
  0xab   : > { %856 = vmatmul.mubr.msk.f32.vlgmr.msra.gmra.mxu0 %vm484_vm9, %v467_v47 }
 0x16b   : > { %v561_v50 = vpop.f32.mrf.mxu0 }
 0x16c   : > { %v562_v53 = vadd.f32 %v561_v50, %v482_v48 }
 0x16d   : > { %v563_v54 = vpop.f32.mrf.mxu0 }
 0x16e   : > { %vm566_vm10 = vcmp.ge.f32.partialorder %v562_v53, 0.0  ;;  %v574_v55 = vmul.f32 %v572_v51, %v562_v53  ;;  %v564_v56 = vadd.f32 %v563_v54, %v482_v48 }
 0x170   : > { %v576_v57 = vsel %vm566_vm10, %v562_v53, %v574_v55  ;;  %vm567_vm11 = vcmp.ge.f32.partialorder %v564_v56, 0.0  ;;  %v575_v58 = vmul.f32 %v572_v51, %v564_v56 }
 0x171   : > { %630 = vst [vmem:[#allocation2 + $0x48] sm:$0xf] %v576_v57  ;;  %658 = vrot.lane.b32.xlu1 %v576_v57, %s894_s8 }
 0x172   : > { %v577_v59 = vsel %vm567_vm11, %v564_v56, %v575_v58 }
 0x173   : > { %631 = vst [vmem:[#allocation2 + $0x28] sm:$0xf] %v577_v59  ;;  %660 = vrot.lane.b32.xlu0 %v577_v59, %s894_s8 }
 0x175   : > { %674 = vrot.lane.b32.xlu1 %v576_v57, %s893_s30 }
 0x177   : > { %676 = vrot.lane.b32.xlu0 %v577_v59, %s893_s30 }
 0x179   : > { %632 = vrot.lane.b32.xlu1 %v576_v57, %s895_s9 }
 0x17b   : > { %634 = vrot.lane.b32.xlu0 %v577_v59, %s895_s9 }
 0x17d   : > { %648 = vrot.lane.b32.xlu1 %v576_v57, %s896_s10 }
 0x17f   : > { %650 = vrot.lane.b32.xlu0 %v577_v59, %s896_s10 }
 0x181   : > { %614 = vrot.lane.b32.xlu1 %v576_v57, %s897_s11 }
 0x183   : > { %616 = vrot.lane.b32.xlu0 %v577_v59, %s897_s11 }
 0x185   : > { %588 = vrot.lane.b32.xlu1 %v576_v57, %s898_s12 }
 0x187   : > { %590 = vrot.lane.b32.xlu0 %v577_v59, %s898_s12 }
 0x189   : > { %604 = vrot.lane.b32.xlu1 %v576_v57, %s899_s13 }
 0x18b   : > { %606 = vrot.lane.b32.xlu0 %v577_v59, %s899_s13  ;;  %s278_s13 = scalar_lea.vmem %s1230_s7, %s862_s26 }
 0x18d   : > { %578 = vrot.lane.b32.xlu1 %v576_v57, %s901_s14 }
 0x18f   : > { %580 = vrot.lane.b32.xlu0 %v577_v59, %s901_s14 }
 0x191   : > { %698 = vperm.xlu1 %883, %v695_v60  }
 0x1e3   : > { %v659_v61 = vpop.permute.xlu1 %658 }
 0x1e5   : > { %v661_v62 = vpop.permute.xlu0 %660 }
 0x1e6   : > { %v662_v3 = vsel %vm427_vm2, %v659_v61, %v661_v62  ;;  %v663_v4 = vsel %vm427_vm2, %v661_v62, %v659_v61 }
 0x1e7   : > { %v664_v5 = vmul.f32 %v662_v3, %v1048_v26  ;;  %v665_v6 = vmul.f32 %v663_v4, %v1051_v27  ;;  %v675_v9 = vpop.permute.xlu1 %674 }
 0x1e9   : > { %v668_v10 = vrot.slane %v664_v5, 4  ;;  %v669_v14 = vrot.slane %v665_v6, 4  ;;  %v677_v17 = vpop.permute.xlu0 %676 }
 0x1ea   : > { %v678_v19 = vsel %vm452_vm0, %v675_v9, %v677_v17  ;;  %v679_v20 = vsel %vm452_vm0, %v677_v17, %v675_v9 }
 0x1eb   : > { %672 = vst [vmem:[#allocation2 + $0x8] sm:$0xf0] %v668_v10  ;;  %673 = vst [vmem:[#allocation2 + $0x20] sm:$0xf0] %v669_v14  ;;  %v680_v21 = vmul.f32 %v1025_v15, %v678_v19  ;;  %v681_v24 = vmul.f32 %v1030_v16, %v679_v20  ;;  %v633_v25 = vpop.permute.xlu1 %632  ;;  %v684_v10 = vld [vmem:[%s1227_s4] sm:$0xf] }
 0x1ed   : > { %682 = vst [vmem:[#allocation2 + $0x40] sm:$0xf] %v680_v21  ;;  %683 = vst [vmem:[#allocation2 + $0x38] sm:$0xf] %v681_v24  ;;  %v635_v26 = vpop.permute.xlu0 %634 }
 0x1ee   : > { %v636_v27 = vsel %vm383_vm1, %v633_v25, %v635_v26  ;;  %v637_v28 = vsel %vm383_vm1, %v635_v26, %v633_v25 }
 0x1ef   : > { %v638_v29 = vmul.f32 %v636_v27, %v1040_v22  ;;  %v639_v32 = vmul.f32 %v637_v28, %v1043_v23  ;;  %v649_v33 = vpop.permute.xlu1 %648 }
 0x1f1   : > { %v642_v34 = vrot.slane %v638_v29, 4  ;;  %v643_v7 = vrot.slane %v639_v32, 4  ;;  %v651_v15 = vpop.permute.xlu0 %650 }
 0x1f2   : > { %v652_v16 = vsel %vm408_vm3, %v649_v33, %v651_v15  ;;  %v653_v35 = vsel %vm408_vm3, %v651_v15, %v649_v33 }
 0x1f3   : > { %646 = vst [vmem:[#allocation2 + $0x48] sm:$0xf0] %v642_v34  ;;  %647 = vst [vmem:[#allocation2 + $0x28] sm:$0xf0] %v643_v7  ;;  %v654_v36 = vmul.f32 %v652_v16, %v1055_v30  ;;  %v655_v39 = vmul.f32 %v653_v35, %v1058_v31  ;;  %v615_v40 = vpop.permute.xlu1 %614 }
 0x1f4   : > { %v694_v22 = vld [vmem:[#allocation2 + $0x38] sm:$0xf]  ;;  %v693_v41 = vld [vmem:[#allocation2 + $0x40] sm:$0xf] }
 0x1f5   : > { %656 = vst [vmem:[#allocation2 + $0x8] sm:$0xf] %v654_v36  ;;  %657 = vst [vmem:[#allocation2 + $0x20] sm:$0xf] %v655_v39  ;;  %v617_v23 = vpop.permute.xlu0 %616  ;;  %857 = vmatprep.subr.msk.mxu1 %vm488_vm4, %v694_v22 }
 0x1f6   : > { %v618_v42 = vsel %vm356_vm5, %v615_v40, %v617_v23  ;;  %v619_v43 = vsel %vm356_vm5, %v617_v23, %v615_v40  ;;  %858 = vmatpush1.msk.msra.mxu1 %vm488_vm4, %v693_v41 }
 0x1f7   : > { %v620_v30 = vmul.f32 %v619_v43, %v1079_v49  ;;  %v621_v31 = vmul.f32 %v618_v42, %v1084_v52  ;;  %v589_v44 = vpop.permute.xlu1 %588 }
 0x1f9   : > { %v624_v12 = vrot.slane %v620_v30, 4  ;;  %v625_v13 = vrot.slane %v621_v31, 4  ;;  %v591_v45 = vpop.permute.xlu0 %590 }
 0x1fa   : > { %v592_v46 = vsel %vm312_vm6, %v589_v44, %v591_v45  ;;  %v593_v47 = vsel %vm312_vm6, %v591_v45, %v589_v44  ;;  %v690_v58 = vld [vmem:[#allocation2 + $0x28] sm:$0xff] }
 0x1fb   : > { %628 = vst [vmem:[#allocation2 + $0x18] sm:$0xf0] %v624_v12  ;;  %629 = vst [vmem:[#allocation2 + $0x10] sm:$0xf0] %v625_v13  ;;  %v594_v48 = vmul.f32 %v593_v47, %v1098_v63  ;;  %v595_v50 = vmul.f32 %v592_v46, %v1101_v2  ;;  %v605_v51 = vpop.permute.xlu1 %604  ;;  %v689_v59 = vld [vmem:[#allocation2 + $0x48] sm:$0xff] }
 0x1fc   : > { %v692_v49 = vld [vmem:[#allocation2 + $0x20] sm:$0xff]  ;;  %v691_v53 = vld [vmem:[#allocation2 + $0x8] sm:$0xff] }
 0x1fd   : > { %v598_v52 = vrot.slane %v594_v48, 4  ;;  %v599_v54 = vrot.slane %v595_v50, 4  ;;  %v607_v55 = vpop.permute.xlu0 %606  ;;  %734 = vmatprep.subr.mxu1 %v692_v49 }
 0x1fe   : > { %v608_v56 = vsel %vm337_vm7, %v605_v51, %v607_v55  ;;  %v609_v57 = vsel %vm337_vm7, %v607_v55, %v605_v51  ;;  %735 = vmatpush1.msra.mxu1 %v691_v53 }
 0x1ff   : > { %602 = vst [vmem:[#allocation2 + $0x30] sm:$0xf0] %v598_v52  ;;  %603 = vst [vmem:[#allocation2] sm:$0xf0] %v599_v54  ;;  %v610_v63 = vmul.f32 %v609_v57, %v1109_v11  ;;  %v611_v2 = vmul.f32 %v608_v56, %v1114_v18  ;;  %736 = vmatprep.subr.mxu1 %v690_v58  ;;  %v579_v60 = vpop.permute.xlu1 %578 }
 0x200   : > { %737 = vmatpush1.msra.mxu1 %v689_v59 }
 0x201   : > { %612 = vst [vmem:[#allocation2 + $0x18] sm:$0xf] %v610_v63  ;;  %613 = vst [vmem:[#allocation2 + $0x10] sm:$0xf] %v611_v2  ;;  %v581_v61 = vpop.permute.xlu0 %580 }
 0x202   : > { %v582_v62 = vsel %vm293_vm8, %v579_v60, %v581_v61  ;;  %v583_v3 = vsel %vm293_vm8, %v581_v61, %v579_v60 }
 0x203   : > { %v584_v4 = vmul.f32 %v583_v3, %v1125_v37  ;;  %v585_v5 = vmul.f32 %v582_v62, %v1128_v38 }
 0x205   : > { %586 = vst [vmem:[#allocation2 + $0x30] sm:$0xf] %v584_v4  ;;  %587 = vst [vmem:[#allocation2] sm:$0xf] %v585_v5 }
 0x208   : > { %v688_v11 = vld [vmem:[#allocation2 + $0x10] sm:$0xff]  ;;  %v687_v18 = vld [vmem:[#allocation2 + $0x18] sm:$0xff] }
 0x209   : > { %738 = vmatprep.subr.mxu1 %v688_v11 }
 0x20a   : > { %739 = vmatpush1.msra.mxu1 %v687_v18 }
 0x20c   : > { %v686_v6 = vld [vmem:[#allocation2] sm:$0xff]  ;;  %v685_v9 = vld [vmem:[#allocation2 + $0x30] sm:$0xff]  ;;  %v699_v8 = vpop.permute.xlu1 %698 }
 0x20d   : > { %740 = vmatprep.subr.mxu1 %v686_v6 }
 0x20e   : > { %741 = vmatpush1.msra.mxu1 %v685_v9 }
 0x20f   : > { %859 = vmatmul.mubr.msk.f32.vlgmr.msra.gmra.mxu1 %vm484_vm9, %v684_v10 }
 0x2cf   : > { %v776_v37 = vpop.f32.mrf.mxu1 }
 0x2d0   : > { %v777_v38 = vadd.f32 %v776_v37, %v699_v8 }
 0x2d1   : > { %v778_v14 = vpop.f32.mrf.mxu1 }
 0x2d2   : > { %v779_v17 = vadd.f32 %v778_v14, %v699_v8  ;;  %v781_v19 = vadd.f32 %v777_v38, %v959_v0 }
 0x2d4   : > { %v782_v20 = vadd.f32 %v779_v17, %v968_v1 }
 0x2d6   : > { %v785_v21 = vcombine.low %v781_v19, %v782_v20 }
 0x2d8   : > { %787 = vst [vmem:[%s278_s13] sm:$0xff] %v785_v21 }
 0x2d9 PF: > { %s17_s24 = sadd.s32 1, %s891_s24  }
 0x2da   : > { %p14_p4 = scmp.ge.s32.totalorder %s17_s24, 4  }
 0x2dc   :  { %16 = sbr.rel (!%p14_p4) target bundleno = 1 (0x1), region = 78 }

</bundles_post_ra>
